<compile_context>
chip_gen: v7x
topology: tpu7x:2x2x1
jax: 0.10.0
libtpu: 0.0.40
codegen_flags: <defaults>
</compile_context>

<pallas_src>
import jax
import jax.numpy as jnp
from jax.experimental import pallas as pl
from jax.experimental.pallas import tpu as pltpu

_LANE = 128
_SUB = 8

# Fixed Sobel weights (same values as Gradient_Net.__init__) -- used by the
# pure-JAX reference; the kernel applies them in separable (1,2,1)x(-1,0,1) form.
_KERNEL_X = ((-1.0, 0.0, 1.0),
             (-2.0, 0.0, 2.0),
             (-1.0, 0.0, 1.0))
_KERNEL_Y = ((-1.0, -2.0, -1.0),
             ( 0.0,  0.0,  0.0),
             ( 1.0,  2.0,  1.0))


def _round_up(a, m):
    return (a + m - 1) // m * m


def _vmem_budget_bytes():
    """VMEM limit with headroom: ~48 MiB on v7x (64 MiB phys), ~96 MiB on v5e/v6e."""
    cap = 64 * 1024 * 1024
    try:
        cap = int(getattr(pltpu.get_tpu_info(), "vmem_capacity_bytes", cap))
    except Exception:
        pass
    return max(32 * 1024 * 1024, min(cap * 3 // 4, 96 * 1024 * 1024))


def _gradient_kernel(xm_ref, xh_ref, o_ref):
    # xm_ref : (B, T, Wp)  input rows [j*T, (j+1)*T) of each image in the block
    # xh_ref : (B, 8, Wp)  input rows [(j+1)*T, (j+1)*T + 8)   (vertical halo)
    # o_ref  : (B, T, Wp)  output rows [j*T, (j+1)*T); already shifted so
    #          (row r, col c) is the Sobel response of the 3x3 window whose
    #          top-left input corner is (r, c) -- i.e. valid output (r, c).
    B, T, Wp = xm_ref.shape

    def sobel(slab):
        # slab: (R, C).  Separable Sobel with lane/sublane rolls (XLU slot).
        R, C = slab.shape
        c1 = pltpu.roll(slab, C - 1, axis=1)      # slab[:, c+1] (wrap -> last cols, masked)
        c2 = pltpu.roll(slab, C - 2, axis=1)      # slab[:, c+2]
        dcol = c2 - slab                          # horizontal (-1, 0, +1)
        scol = slab + 2.0 * c1 + c2               # horizontal ( 1, 2,  1)
        d1 = pltpu.roll(dcol, R - 1, axis=0)      # dcol[r+1]  (wrap -> last rows, fixed up)
        d2 = pltpu.roll(dcol, R - 2, axis=0)      # dcol[r+2]
        s2 = pltpu.roll(scol, R - 2, axis=0)      # scol[r+2]
        return jnp.abs(dcol + 2.0 * d1 + d2) + jnp.abs(s2 - scol)

    # Batch-vectorized main pass on the contiguous (B*T, Wp) slab.  Only the
    # last 2 rows of each image's tile pick up wrapped (next-image) rows.
    g = sobel(xm_ref[...].reshape(B * T, Wp))
    o_ref[...] = g.reshape(B, T, Wp).astype(o_ref.dtype)

    # Halo fix-up: recompute the last 8 output rows of every image from the
    # tile's last 8 input rows + the halo block; one aligned full-width 8-row
    # store per image (B is small and static, the patch is only 16 rows).
    for b in range(B):
        patch = jnp.concatenate(
            [xm_ref[b, pl.ds(T - _SUB, _SUB), :], xh_ref[b]], axis=0)   # (16, Wp)
        gp = sobel(patch)[:_SUB, :]
        o_ref[b, pl.ds(T - _SUB, _SUB), :] = gp.astype(o_ref.dtype)


def gradient_net(x, *, block_bytes=None, max_images_per_block=8,
                 tile_rows=None, out_dtype=jnp.float32):
    """x: (N, 1, H, W) -> (N, 1, H-2, W-2) (== Gradient_Net.forward)."""
    x = x.astype(jnp.float32)
    N, C, H, W = x.shape
    assert C == 1, "Gradient_Net uses single-channel 3x3 Sobel kernels"
    assert H >= 3 and W >= 3
    Ho, Wo = H - 2, W - 2

    vmem_limit = _vmem_budget_bytes()
    if block_bytes is None:
        block_bytes = min(8 * 1024 * 1024, max(2 * 1024 * 1024, vmem_limit // 10))

    # Lane-dense block width.  The ARRAY stays unpadded (no jnp.pad pass);
    # the partial edge lane block is a masked Pallas copy.
    Wp = _round_up(W, _LANE)

    # Row tile: balanced over the output height, multiple of 8, >= 64 rows
    # (so the tiny halo DMA is well amortized), within the byte budget.
    if tile_rows is None:
        rows_budget = max(64, (block_bytes // (Wp * 4)) // _SUB * _SUB)
    else:
        rows_budget = max(_SUB, _round_up(tile_rows, _SUB))
    n_rt = pl.cdiv(Ho, rows_budget)
    T = _round_up(pl.cdiv(Ho, n_rt), _SUB)
    n_rt = pl.cdiv(Ho, T)

    # Pack several small images per grid step (amortizes ~0.35 us step overhead).
    B = max(1, min(N, max_images_per_block, max(1, block_bytes // (T * Wp * 4))))
    n_bt = pl.cdiv(N, B)

    # Guarantee >= 2 grid steps so the 2nd TensorCore (v7x) gets work.
    if n_bt * n_rt < 2:
        if N >= 2:
            B = (N + 1) // 2
            n_bt = pl.cdiv(N, B)
        elif Ho > _SUB:
            T = _round_up(pl.cdiv(Ho, 2), _SUB)
            n_rt = pl.cdiv(Ho, T)

    t_blocks = T // _SUB
    max_halo_idx = pl.cdiv(H, _SUB) - 1      # clamp keeps the halo index in range;
                                             # the clamped case only feeds masked rows.

    x3 = x.reshape(N, H, W)                  # drop channel dim: free bitcast reshape

    out = pl.pallas_call(
        _gradient_kernel,
        out_shape=jax.ShapeDtypeStruct((N, Ho, Wo), out_dtype),
        grid=(n_bt, n_rt),
        in_specs=[
            # main row tile: input rows [j*T, (j+1)*T)
            pl.BlockSpec((B, T, Wp), lambda n, j: (n, j, 0)),
            # 8-row vertical halo starting at input row (j+1)*T (same array)
            pl.BlockSpec((B, _SUB, Wp),
                         lambda n, j: (n, jnp.minimum((j + 1) * t_blocks,
                                                      max_halo_idx), 0)),
        ],
        out_specs=pl.BlockSpec((B, T, Wp), lambda n, j: (n, j, 0)),
        compiler_params=pltpu.CompilerParams(
            dimension_semantics=("parallel", "parallel"),
            vmem_limit_bytes=vmem_limit),
    )(x3, x3)

    return out.reshape(N, 1, Ho, Wo)


def _reference(x):
    """Pure-JAX reference (valid conv with the fixed Sobel weights)."""
    kx = jnp.array(_KERNEL_X, jnp.float32)
    ky = jnp.array(_KERNEL_Y, jnp.float32)
    N, C, H, W = x.shape
    Ho, Wo = H - 2, W - 2
    gx = jnp.zeros((N, C, Ho, Wo), jnp.float32)
    gy = jnp.zeros((N, C, Ho, Wo), jnp.float32)
    for di in range(3):
        for dj in range(3):
            win = x[:, :, di:di + Ho, dj:dj + Wo]
            gx = gx + kx[di, dj] * win
            gy = gy + ky[di, dj] * win
    return jnp.abs(gx) + jnp.abs(gy)


if __name__ == "__main__":
    k1, k2, k3 = jax.random.split(jax.random.PRNGKey(0), 3)

    # Small canonical test shape (exercises W < 128 masked lane block + the
    # forced 2-step grid split).
    x = jax.random.normal(k1, (2, 1, 16, 16), dtype=jnp.float32)
    out = gradient_net(x)
    jax.block_until_ready(out)
    ref = _reference(x)
    assert out.shape == (2, 1, 14, 14)
    assert jnp.allclose(out, ref, atol=1e-4, rtol=1e-4)

    # Multi row-tile + halo + non-128-multiple width + B>1 batch packing.
    x2 = jax.random.normal(k2, (3, 1, 52, 200), dtype=jnp.float32)
    out2 = gradient_net(x2, tile_rows=16)
    jax.block_until_ready(out2)
    ref2 = _reference(x2)
    assert out2.shape == (3, 1, 50, 198)
    assert jnp.allclose(out2, ref2, atol=1e-4, rtol=1e-4)

    # Default tiling path with clamped halo index + packed images per step.
    x3t = jax.random.normal(k3, (4, 1, 40, 136), dtype=jnp.float32)
    out3 = gradient_net(x3t)
    jax.block_until_ready(out3)
    ref3 = _reference(x3t)
    assert out3.shape == (4, 1, 38, 134)
    assert jnp.allclose(out3, ref3, atol=1e-4, rtol=1e-4)

    print("KERNEL_OK")
</pallas_src>

<mosaic_0001>
module attributes {stable_mosaic.version = 11 : i64} {
  func.func @_gradient_kernel(%arg0: i32, %arg1: i32, %arg2: memref<1x16x128xf32, #tpu.memory_space<vmem>>, %arg3: memref<1x8x128xf32, #tpu.memory_space<vmem>>, %arg4: memref<1x16x128xf32, #tpu.memory_space<vmem>>) attributes {dimension_semantics = [#tpu.dimension_semantics<parallel>, #tpu.dimension_semantics<parallel>], iteration_bounds = array<i64: 2, 1>, scalar_prefetch = 0 : i64, scratch_operands = 0 : i64, tpu.core_type = #tpu.core_type<tc>, window_params = [{transform_indices = @transform_0, window_bounds = array<i64: 1, 16, 128>}, {transform_indices = @transform_1, window_bounds = array<i64: 1, 8, 128>}, {transform_indices = @transform_2, window_bounds = array<i64: 1, 16, 128>}]} {
    %c0 = arith.constant 0 : index
    %c0_0 = arith.constant 0 : index
    %c0_1 = arith.constant 0 : index
    %0 = vector.load %arg2[%c0, %c0_0, %c0_1] : memref<1x16x128xf32, #tpu.memory_space<vmem>>, vector<1x16x128xf32>
    %1 = vector.shape_cast %0 : vector<1x16x128xf32> to vector<16x128xf32>
    %c127_i32 = arith.constant 127 : i32
    %2 = tpu.dynamic_rotate %1 by %c127_i32 dim 1 : vector<16x128xf32>, i32 -> vector<16x128xf32>
    %c126_i32 = arith.constant 126 : i32
    %3 = tpu.dynamic_rotate %1 by %c126_i32 dim 1 : vector<16x128xf32>, i32 -> vector<16x128xf32>
    %4 = arith.subf %3, %1 : vector<16x128xf32>
    %cst = arith.constant 2.000000e+00 : f32
    %5 = vector.broadcast %cst : f32 to vector<16x128xf32>
    %6 = arith.mulf %5, %2 : vector<16x128xf32>
    %7 = arith.addf %1, %6 : vector<16x128xf32>
    %8 = arith.addf %7, %3 : vector<16x128xf32>
    %c15_i32 = arith.constant 15 : i32
    %9 = tpu.dynamic_rotate %4 by %c15_i32 dim 0 : vector<16x128xf32>, i32 -> vector<16x128xf32>
    %c14_i32 = arith.constant 14 : i32
    %10 = tpu.dynamic_rotate %4 by %c14_i32 dim 0 : vector<16x128xf32>, i32 -> vector<16x128xf32>
    %c14_i32_2 = arith.constant 14 : i32
    %11 = tpu.dynamic_rotate %8 by %c14_i32_2 dim 0 : vector<16x128xf32>, i32 -> vector<16x128xf32>
    %cst_3 = arith.constant 2.000000e+00 : f32
    %12 = vector.broadcast %cst_3 : f32 to vector<16x128xf32>
    %13 = arith.mulf %12, %9 : vector<16x128xf32>
    %14 = arith.addf %4, %13 : vector<16x128xf32>
    %15 = arith.addf %14, %10 : vector<16x128xf32>
    %16 = math.absf %15 : vector<16x128xf32>
    %17 = arith.subf %11, %8 : vector<16x128xf32>
    %18 = math.absf %17 : vector<16x128xf32>
    %19 = arith.addf %16, %18 : vector<16x128xf32>
    %20 = vector.shape_cast %19 : vector<16x128xf32> to vector<1x16x128xf32>
    %c0_4 = arith.constant 0 : index
    %c0_5 = arith.constant 0 : index
    %c0_6 = arith.constant 0 : index
    %21 = vector.load %arg4[%c0_4, %c0_5, %c0_6] : memref<1x16x128xf32, #tpu.memory_space<vmem>>, vector<1x16x128xf32>
    tpu.vector_store %arg4[%c0_4, %c0_5, %c0_6], %20 {strides = array<i32>} : memref<1x16x128xf32, #tpu.memory_space<vmem>>, vector<1x16x128xf32>,
    %c0_7 = arith.constant 0 : index
    %c8 = arith.constant 8 : index
    %c0_8 = arith.constant 0 : index
    %22 = vector.load %arg2[%c0_7, %c8, %c0_8] : memref<1x16x128xf32, #tpu.memory_space<vmem>>, vector<1x8x128xf32>
    %23 = vector.shape_cast %22 : vector<1x8x128xf32> to vector<8x128xf32>
    %c0_9 = arith.constant 0 : index
    %c0_10 = arith.constant 0 : index
    %c0_11 = arith.constant 0 : index
    %24 = vector.load %arg3[%c0_9, %c0_10, %c0_11] : memref<1x8x128xf32, #tpu.memory_space<vmem>>, vector<1x8x128xf32>
    %25 = vector.shape_cast %24 : vector<1x8x128xf32> to vector<8x128xf32>
    %26 = tpu.concatenate %23, %25 in 0 : vector<8x128xf32>, vector<8x128xf32> -> vector<16x128xf32>
    %c127_i32_12 = arith.constant 127 : i32
    %27 = tpu.dynamic_rotate %26 by %c127_i32_12 dim 1 : vector<16x128xf32>, i32 -> vector<16x128xf32>
    %c126_i32_13 = arith.constant 126 : i32
    %28 = tpu.dynamic_rotate %26 by %c126_i32_13 dim 1 : vector<16x128xf32>, i32 -> vector<16x128xf32>
    %29 = arith.subf %28, %26 : vector<16x128xf32>
    %cst_14 = arith.constant 2.000000e+00 : f32
    %30 = vector.broadcast %cst_14 : f32 to vector<16x128xf32>
    %31 = arith.mulf %30, %27 : vector<16x128xf32>
    %32 = arith.addf %26, %31 : vector<16x128xf32>
    %33 = arith.addf %32, %28 : vector<16x128xf32>
    %c15_i32_15 = arith.constant 15 : i32
    %34 = tpu.dynamic_rotate %29 by %c15_i32_15 dim 0 : vector<16x128xf32>, i32 -> vector<16x128xf32>
    %c14_i32_16 = arith.constant 14 : i32
    %35 = tpu.dynamic_rotate %29 by %c14_i32_16 dim 0 : vector<16x128xf32>, i32 -> vector<16x128xf32>
    %c14_i32_17 = arith.constant 14 : i32
    %36 = tpu.dynamic_rotate %33 by %c14_i32_17 dim 0 : vector<16x128xf32>, i32 -> vector<16x128xf32>
    %cst_18 = arith.constant 2.000000e+00 : f32
    %37 = vector.broadcast %cst_18 : f32 to vector<16x128xf32>
    %38 = arith.mulf %37, %34 : vector<16x128xf32>
    %39 = arith.addf %29, %38 : vector<16x128xf32>
    %40 = arith.addf %39, %35 : vector<16x128xf32>
    %41 = math.absf %40 : vector<16x128xf32>
    %42 = arith.subf %36, %33 : vector<16x128xf32>
    %43 = math.absf %42 : vector<16x128xf32>
    %44 = arith.addf %41, %43 : vector<16x128xf32>
    %45 = vector.extract_strided_slice %44 {offsets = [0, 0], sizes = [8, 128], strides = [1, 1]} : vector<16x128xf32> to vector<8x128xf32>
    %c0_19 = arith.constant 0 : index
    %c8_20 = arith.constant 8 : index
    %c0_21 = arith.constant 0 : index
    %46 = vector.load %arg4[%c0_19, %c8_20, %c0_21] : memref<1x16x128xf32, #tpu.memory_space<vmem>>, vector<1x8x128xf32>
    %47 = vector.shape_cast %46 : vector<1x8x128xf32> to vector<8x128xf32>
    %48 = vector.shape_cast %45 : vector<8x128xf32> to vector<1x8x128xf32>
    tpu.vector_store %arg4[%c0_19, %c8_20, %c0_21], %48 {strides = array<i32>} : memref<1x16x128xf32, #tpu.memory_space<vmem>>, vector<1x8x128xf32>,
    return
  }
  func.func @transform_0(%arg0: i32, %arg1: i32) -> (i32, i32, i32) {
    %c0_i32 = arith.constant 0 : i32
    %c0_i32_0 = arith.constant 0 : i32
    return %arg0, %arg1, %c0_i32 : i32, i32, i32
  }
  func.func @transform_1(%arg0: i32, %arg1: i32) -> (i32, i32, i32) {
    %c1_i32 = arith.constant 1 : i32
    %0 = arith.addi %arg1, %c1_i32 : i32
    %c2_i32 = arith.constant 2 : i32
    %1 = arith.muli %0, %c2_i32 : i32
    %c1_i32_0 = arith.constant 1 : i32
    %2 = arith.minsi %1, %c1_i32_0 : i32
    %c0_i32 = arith.constant 0 : i32
    %c0_i32_1 = arith.constant 0 : i32
    return %arg0, %2, %c0_i32 : i32, i32, i32
  }
  func.func @transform_2(%arg0: i32, %arg1: i32) -> (i32, i32, i32) {
    %c0_i32 = arith.constant 0 : i32
    %c0_i32_0 = arith.constant 0 : i32
    return %arg0, %arg1, %c0_i32 : i32, i32, i32
  }
}

</mosaic_0001>

<bundles_post_ra>
// kernel: tpu_custom_call.1
= control target key start
LH: loop header
LB: loop body
LE: loop exit
PB: predicated region body
PF: predicated region fallthrough
CT: control target
= control target key end

     0   :  { %7 = vsyncpa [#allocation3], 0  ;;  %s852_s0 = inlined_call_operand.hbm [shape: f32[2,16,16], index: 0, kind: input, shape index: {}]   ;;  %s853_s1 = inlined_call_operand.hbm [shape: f32[2,16,16], index: 1, kind: input, shape index: {}]   ;;  %s854_s2 = inlined_call_operand.vmem [shape: f32[2,14,14], index: 2, kind: output, shape index: {}]  }
   0x1   :  { %9 = vsyncpa [#allocation3 + $0x1], 0 }
   0x2   :  { %10 = vsyncpa [#allocation5], 0 }
   0x3   :  { %12 = vsyncpa [#allocation5 + $0x1], 0  ;;  %s677_s9 = smov 0   ;;  %s679_s10 = smov 0  }
   0x4   :  { %s681_s11 = smov 0   ;;  %s683_s12 = smov 0  }
   0x5   :  { %s685_s13 = smov 0   ;;  %s687_s14 = smov 0  }
   0x6 LB: > { %s454_s15 = sadd.s32 4294967295, %s654_s14   ;;  %s30_s16 = sadd.s32 1, %s650_s13  ;;  %s654_s14 = sphi %s687_s14, %s18_s14   ;;  %s650_s13 = sphi %s685_s13, %s866_s13   ;;  %s646_s12 = sphi %s683_s12, %s865_s12   ;;  %s642_s11 = sphi %s681_s11, %s864_s11   ;;  %s638_s10 = sphi %s679_s10, %s863_s10   ;;  %s634_s9 = sphi %s677_s9, %s862_s9  }
   0x7   : > { %p32_p0 = scmp.ge.s32.totalorder %s30_s16, 2  ;;  %s39_s17 = sadd.s32 1, %s642_s11 }
   0x8   : > { %p46_p1 = scmp.ne.s32.totalorder %s642_s11, %s638_s10  ;;  %p47_p2 = scmp.eq.s32.totalorder %s654_s14, 0 }
   0x9   : > { %s868_s16 = smov (%p32_p0, %s30_s16), 0  ;;  %p52_p4 = scmp.ne.s32.totalorder %s638_s10, %s634_s9 }
   0xa   : > { %p713_p3 = por %p47_p2, %p46_p1  ;;  %s34_s19 = ssub.s32 %s650_s13, %s868_s16 }
   0xb   : > { %p53_p5 = scmp.eq.s32.totalorder %s454_s15, 0  ;;  %p37_p6 = scmp.eq.s32.totalorder %s34_s19, 0 }
   0xc   : > { %p487_p8 = scmp.lt.s32.totalorder %s654_s14, 2  ;;  %s729_s22 = sand.u32 1, %s642_s11  }
   0xd   : > { %p720_p7 = por %p53_p5, %p52_p4  ;;  %s471_s23 = sshll.u32 %s650_s13, 8 }
   0xe   : > { %s726_s21 = scalar_select %p37_p6, %s642_s11, %s39_s17  }
   0xf   : > { %s857_s20 = scalar_select %p720_p7, 1, 0 }
  0x10   : > { %s458_s24 = sshll.u32 %s729_s22, 4  ;;  %s738_s27 = scalar_lea.hbm %s852_s0, %s471_s23 }
  0x11   : > { %s144_s28 = scalar_lea.vmem [#allocation2], %s458_s24  ;;  %p742_p9 = pnand %p487_p8, %p713_p3 }
  0x12   : > { %s153_s29 = sshll.u32 %s144_s28, 4  ;;  %s141_s3 = scalar_lea.sflag [#allocation3], %s729_s22  ;;  %s746_s29 = int_to_ptr.vmem [resolvable:$true] %s153_s29 }
  0x13   : > { %s540_s4 = scalar_lea.hbm %s738_s27, 256  ;;  %p542_p11 = pneg %p742_p9 }
  0x14   : > { %p541_p10 = scmp.ne.s32.totalorder %s738_s27, %s540_s4  ;;  %s545_s7 = scalar_lea.hbm %s852_s0, 512 }
  0x15   : > { %p546_p0 = scmp.lt.u32.totalorder %s738_s27, %s852_s0  ;;  %p547_p1 = scmp.lt.u32.totalorder %s545_s7, %s540_s4 }
  0x16   : > { %p543_p12 = pnand %p542_p11, %p541_p10  ;;  %p549_p3 = scmp.lt.u32.totalorder %s540_s4, %s738_s27 }
  0x17   : > { %p548_p2 = por %p547_p1, %p546_p0 }
  0x18   : > { %p544_p13 = pneg %p543_p12 }
  0x19   : > { %p550_p4 = por %p549_p3, %p548_p2 }
  0x1b   : > { %p551_p5 = pnand %p550_p4, %p544_p13 }
  0x1d   : > { %554 = shalt.err (!%p551_p5)
}
  0x1e   : > { %s555_s15 = scalar_lea.vmem %s746_s29, 256  ;;  %s656_s17 = smov [#allocation2]  }
  0x1f   : > { %p556_p6 = scmp.ne.s32.totalorder %s746_s29, %s555_s15  ;;  %s560_s18 = sshll.u32 %s656_s17, 4  ;;  %s561_s18 = int_to_ptr.vmem [resolvable:$false] %s560_s18 }
  0x20   : > { %s562_s19 = scalar_lea.vmem %s561_s18, 512  ;;  %p563_p12 = scmp.lt.s32.totalorder %s746_s29, %s561_s18 }
  0x21   : > { %p558_p8 = pnand %p556_p6, %p542_p11  ;;  %p564_p0 = scmp.lt.s32.totalorder %s562_s19, %s555_s15 }
  0x23   : > { %p559_p10 = pneg %p558_p8  ;;  %p565_p1 = por %p564_p0, %p563_p12 }
  0x25   : > { %p566_p2 = pnand %p565_p1, %p559_p10 }
  0x27   : > { %569 = shalt.err (!%p566_p2)
}
  0x28   : > { %s657_s24 = smov 128   ;;  %s658_s25 = smov 8  }
  0x29   : > { %483 = dma.hbm_to_vmem [thread:$0]  (!%p742_p9), %s738_s27, 256, %s746_s29, %s141_s3, %s657_s24, %s657_s24, %s658_s25  }
  0x2a   : > { %p464_p13 = scmp.ge.s32.totalorder %s654_s14, 1  ;;  %p185_p3 = scmp.lt.s32.totalorder %s654_s14, 3 }
  0x2b   : > { %s461_s26 = sshll.u32 %s729_s22, 3  ;;  %s473_s4 = sadd.s32 128, %s471_s23 }
  0x2c   : > { %p779_p4 = pnand %p464_p13, %p185_p3  ;;  %s167_s5 = scalar_lea.vmem [#allocation4], %s461_s26 }
  0x2d   : > { %s180_s6 = sshll.u32 %s167_s5, 4  ;;  %s788_s9 = scalar_lea.hbm %s853_s1, %s473_s4  ;;  %s181_s6 = int_to_ptr.vmem [resolvable:$true] %s180_s6 }
  0x2e   : > { %s859_s28 = scalar_select %p779_p4, 1, 0 }
  0x2f   : > { %s164_s27 = scalar_lea.sflag [#allocation5], %s729_s22  ;;  %s570_s29 = scalar_lea.hbm %s788_s9, 128 }
  0x30   : > { %p571_p5 = scmp.ne.s32.totalorder %s788_s9, %s570_s29  ;;  %s575_s15 = scalar_lea.hbm %s853_s1, 512 }
  0x31   : > { %p576_p10 = scmp.lt.u32.totalorder %s788_s9, %s853_s1  ;;  %p577_p12 = scmp.lt.u32.totalorder %s575_s15, %s570_s29 }
  0x32   : > { %p573_p6 = pnand %p571_p5, %p542_p11  ;;  %p579_p1 = scmp.lt.u32.totalorder %s570_s29, %s788_s9 }
  0x33   : > { %p578_p0 = por %p577_p12, %p576_p10 }
  0x34   : > { %p574_p8 = pneg %p573_p6 }
  0x35   : > { %p580_p2 = por %p579_p1, %p578_p0 }
  0x37   : > { %p581_p13 = pnand %p580_p2, %p574_p8 }
  0x39   : > { %584 = shalt.err (!%p581_p13)
}
  0x3a   : > { %s585_s22 = scalar_lea.vmem %s181_s6, 128  ;;  %s659_s19 = smov [#allocation4]  }
  0x3b   : > { %p586_p3 = scmp.ne.s32.totalorder %s181_s6, %s585_s22  ;;  %s590_s24 = sshll.u32 %s659_s19, 4  ;;  %s591_s24 = int_to_ptr.vmem [resolvable:$false] %s590_s24 }
  0x3c   : > { %s592_s25 = scalar_lea.vmem %s591_s24, 256  ;;  %p593_p7 = scmp.lt.s32.totalorder %s181_s6, %s591_s24 }
  0x3d   : > { %p588_p5 = pnand %p586_p3, %p542_p11  ;;  %p594_p4 = scmp.lt.s32.totalorder %s592_s25, %s585_s22 }
  0x3f   : > { %p589_p6 = pneg %p588_p5  ;;  %p595_p10 = por %p594_p4, %p593_p7 }
  0x41   : > { %p596_p12 = pnand %p595_p10, %p589_p6 }
  0x43   : > { %599 = shalt.err (!%p596_p12)
}
  0x44   : > { %486 = dma.hbm_to_vmem [thread:$0]  (!%p742_p9), %s788_s9, 128, %s181_s6, %s164_s27  }
  0x45   : > { %p860_p8 = scmp.ne.s32.totalorder %s859_s28, 0 }
  0x46   : > { %s191_s26 = sand.u32 (!%p860_p8), 1, %s638_s10   ;;  %p861_p11 = scmp.ne.s32.totalorder (!%p860_p8), %s857_s20, 0 }
  0x47   : > { %189 = sbr.rel (%p860_p8) target bundleno = 226 (0xe2), region = 28  ;;  %s465_s4 = sshll.u32 (!%p860_p8), %s191_s26, 4 }
  0x48   : > { %s192_s5 = scalar_lea.sflag (!%p860_p8), [#allocation3], %s191_s26  ;;  %s195_s7 = scalar_lea.vmem (!%p860_p8), [#allocation2], %s465_s4 }
  0x4e   : > { %625 = dma.done.wait (%p861_p11), %s192_s5, 256  }
  0x4f   : > { %627 = vsyncadd (%p861_p11), %s192_s5, 4294967040  ;;  %s466_s8 = sshll.u32 %s191_s26, 3  ;;  %s201_s29 = scalar_lea.sflag [#allocation5], %s191_s26 }
  0x50   : > { %s204_s30 = scalar_lea.vmem [#allocation4], %s466_s8 }
  0x51   : > { %629 = dma.done.wait (%p861_p11), %s201_s29, 128  }
  0x52   : > { %631 = vsyncadd (%p861_p11), %s201_s29, 4294967168  ;;  %v249_v0 = vld [vmem:[%s195_s7] sm:$0xff]  ;;  %s660_s28 = smov 126   ;;  %s661_s6 = smov 127   ;;  %v250_v1 = vld [vmem:[%s195_s7 + $0x8] sm:$0xff]  ;;  %v269_v3 = vlaneseq }
  0x53   : > { %255 = vrot.lane.b32.xlu1 %v249_v0, %s660_s28  ;;  %251 = vrot.lane.b32.xlu0 %v249_v0, %s661_s6  ;;  %v300_v2 = vld [vmem:[%s204_s30] sm:$0xff]  ;;  %p240_p7 = scmp.lt.s32.totalorder %s646_s12, 1 }
  0x54   : > { %v270_v7 = vshrl.u32 %v269_v3, 7 }
  0x55   : > { %s870_s12 = smov (!%p240_p7, %s646_s12), 1 }
  0x56   : > { %vm271_vm0 = vcmp.lt.s32.totalorder %v270_v7, 7  ;;  %vm276_vm1 = vcmp.lt.s32.totalorder %v270_v7, 6  ;;  %s474_s20 = sshll.u32 %s870_s12, 4 }
  0x57   : > { %257 = vrot.lane.b32.xlu1 %v250_v1, %s660_s28  ;;  %253 = vrot.lane.b32.xlu0 %v250_v1, %s661_s6  ;;  %s247_s23 = scalar_lea.vmem %s854_s2, %s474_s20 }
  0x5b   : > { %303 = vrot.lane.b32.xlu1 %v300_v2, %s661_s6  ;;  %301 = vrot.lane.b32.xlu0 %v250_v1, %s661_s6 }
  0x5f   : > { %307 = vrot.lane.b32.xlu1 %v300_v2, %s660_s28  ;;  %305 = vrot.lane.b32.xlu0 %v250_v1, %s660_s28 }
  0xc5   : > { %v256_v4 = vpop.permute.xlu1 %255  ;;  %v252_v5 = vpop.permute.xlu0 %251 }
  0xc6   : > { %v261_v6 = vmul.f32 2.0, %v252_v5  ;;  %v259_v8 = vsub.f32 %v256_v4, %v249_v0 }
  0xc8   : > { %v263_v9 = vadd.f32 %v261_v6, %v249_v0  ;;  %v267_v14 = vrot.slane %v259_v8, 1  ;;  %v274_v24 = vrot.slane %v259_v8, 2 }
  0xc9   : > { %v258_v10 = vpop.permute.xlu1 %257  ;;  %v254_v11 = vpop.permute.xlu0 %253 }
  0xca   : > { %v260_v12 = vsub.f32 %v258_v10, %v250_v1  ;;  %v262_v13 = vmul.f32 2.0, %v254_v11  ;;  %v265_v15 = vadd.f32 %v263_v9, %v256_v4 }
  0xcc   : > { %v268_v16 = vrot.slane %v260_v12, 1  ;;  %v264_v17 = vadd.f32 %v262_v13, %v250_v1  ;;  %v275_v18 = vrot.slane %v260_v12, 2  ;;  %v279_v27 = vrot.slane %v265_v15, 2 }
  0xcd   : > { %v304_v19 = vpop.permute.xlu1 %303  ;;  %v302_v20 = vpop.permute.xlu0 %301 }
  0xce   : > { %v272_v21 = vsel %vm271_vm0, %v267_v14, %v268_v16  ;;  %v266_v22 = vadd.f32 %v264_v17, %v258_v10  ;;  %v312_v23 = vmul.f32 2.0, %v304_v19  ;;  %v311_v26 = vmul.f32 2.0, %v302_v20 }
  0xcf   : > { %v283_v25 = vmul.f32 2.0, %v272_v21  ;;  %v277_v30 = vsel %vm276_vm1, %v274_v24, %v275_v18 }
  0xd0   : > { %v280_v28 = vrot.slane %v266_v22, 2  ;;  %v314_v29 = vadd.f32 %v312_v23, %v300_v2  ;;  %v313_v33 = vadd.f32 %v311_v26, %v250_v1 }
  0xd1   : > { %v285_v31 = vadd.f32 %v283_v25, %v259_v8  ;;  %v308_v32 = vpop.permute.xlu1 %307  ;;  %v306_v34 = vpop.permute.xlu0 %305 }
  0xd2   : > { %v281_v35 = vsel %vm276_vm1, %v279_v27, %v280_v28  ;;  %v310_v36 = vsub.f32 %v308_v32, %v300_v2  ;;  %v316_v37 = vadd.f32 %v314_v29, %v308_v32  ;;  %v309_v38 = vsub.f32 %v306_v34, %v250_v1 }
  0xd3   : > { %v287_v39 = vadd.f32 %v285_v31, %v277_v30  ;;  %v291_v40 = vsub.f32 %v281_v35, %v265_v15  ;;  %v315_v41 = vadd.f32 %v313_v33, %v306_v34 }
  0xd4   : > { %v318_v42 = vrot.slane %v310_v36, 1  ;;  %v324_v43 = vrot.slane %v316_v37, 2  ;;  %v317_v44 = vrot.slane %v309_v38, 1  ;;  %v321_v48 = vrot.slane %v310_v36, 2 }
  0xd5   : > { %v289_v45 = vand.u32 2147483647, %v287_v39  ;;  %v293_v46 = vand.u32 2147483647, %v291_v40  ;;  %v323_v47 = vrot.slane %v315_v41, 2  ;;  %v320_v50 = vrot.slane %v309_v38, 2 }
  0xd6   : > { %v319_v49 = vsel %vm271_vm0, %v317_v44, %v318_v42 }
  0xd7   : > { %v295_v51 = vadd.f32 %v293_v46, %v289_v45  ;;  %v325_v52 = vsel %vm276_vm1, %v323_v47, %v324_v43  ;;  %v326_v53 = vmul.f32 2.0, %v319_v49  ;;  %v322_v56 = vsel %vm276_vm1, %v320_v50, %v321_v48 }
  0xd8   : > { %v330_v55 = vsub.f32 %v325_v52, %v315_v41 }
  0xd9   : > { %297 = vst [vmem:[%s247_s23] sm:$0xff] %v295_v51  ;;  %v327_v54 = vadd.f32 %v326_v53, %v309_v38 }
  0xda   : > { %v331_v59 = vand.u32 2147483647, %v330_v55 }
  0xdb   : > { %v328_v57 = vadd.f32 %v327_v54, %v322_v56 }
  0xdd   : > { %v329_v58 = vand.u32 2147483647, %v328_v57 }
  0xdf   : > { %v332_v60 = vadd.f32 %v331_v59, %v329_v58 }
  0xe1   : > { %333 = vst [vmem:[%s247_s23 + $0x8] sm:$0xff] %v332_v60 }
  0xe2 PF: > { %s18_s14 = sadd.s32 1, %s654_s14   ;;  %s862_s9 = smov %s638_s10 }
  0xe3   : > { %p15_p9 = scmp.ge.s32.totalorder %s18_s14, 4   ;;  %s863_s10 = smov %s642_s11 }
  0xe4   : > { %s864_s11 = smov %s726_s21  ;;  %s865_s12 = smov %s650_s13 }
  0xe5   : > { %s866_s13 = smov %s868_s16  ;;  %17 = sbr.rel (!%p15_p9) target bundleno = 6 (0x6), region = 81 }
  0xec   :  { %364 = vsyncpa [#allocation3], 1 }
  0xed   :  { %366 = vsyncpa [#allocation3 + $0x1], 1 }
  0xee   :  { %367 = vsyncpa [#allocation5], 1 }
  0xef   :  { %369 = vsyncpa [#allocation5 + $0x1], 1 }

</bundles_post_ra>
